<compile_context>
chip_gen: v7x
topology: tpu7x:2x2x1
jax: 0.10.0
libtpu: 0.0.40
codegen_flags: <defaults>
</compile_context>

<pallas_src>
import functools
import math
import random

import jax
import jax.numpy as jnp
from jax.experimental import pallas as pl
from jax.experimental.pallas import tpu as pltpu

_LANE = 128
_LANE_CANDIDATES = (4096, 2048, 1024, 512, 256, 128)
_MEGACORE_SPLIT_MIN_BYTES = 1 << 20      # below this, don't shard across TensorCores


def _sublane_for(dtype) -> int:
    """Minimum second-to-last tile dim for this dtype (f32: 8, bf16: 16, int8/fp8: 32)."""
    return {4: 8, 2: 16, 1: 32}.get(jnp.dtype(dtype).itemsize, 8)


@functools.lru_cache(maxsize=1)
def _hw_config():
    """(block_byte_budget, vmem_limit_bytes, num_tensorcores) — generation-aware."""
    vmem_bytes = None
    try:
        vmem_bytes = int(pltpu.get_tpu_info().vmem_capacity_bytes)
    except Exception:
        vmem_bytes = None
    kind = ""
    try:
        kind = jax.devices()[0].device_kind.lower()
    except Exception:
        pass
    num_tc = 2 if ("v7" in kind or "7x" in kind) else 1
    if vmem_bytes is None:
        # Unknown: be conservative only if this looks like a 2-TC (v7x) part.
        vmem_bytes = 64 * 1024 * 1024 if num_tc >= 2 else 128 * 1024 * 1024
    if vmem_bytes >= 100 * 1024 * 1024:
        # v5e / v6e: 128 MiB physical VMEM, single TC -> big blocks, few steps.
        return 8 * 1024 * 1024, 64 * 1024 * 1024, num_tc
    # v7x-class: 64 MiB physical VMEM -> smaller blocks with explicit headroom.
    return 6 * 1024 * 1024, 48 * 1024 * 1024, num_tc


def _pick_layout(n: int, dtype, block_budget_bytes: int, num_tc: int):
    """Pick (lane_width, rows, block_rows); None if n isn't a multiple of 128.

    rows * lane_width == n exactly.  block_rows is either the full row count
    (single block -- the (sublane,128) divisibility rule is waived when the
    block equals the full array) or a sublane multiple that fits the
    per-generation block budget; a partial final grid block is fine (Pallas
    pads out-of-bounds reads and drops out-of-bounds writes).
    """
    s = _sublane_for(dtype)
    itemsize = jnp.dtype(dtype).itemsize
    total_bytes = n * itemsize
    for w in _LANE_CANDIDATES:                     # widest lane-dense slab first
        if n % w:
            continue
        rows = n // w
        budget_rows = max(s, (block_budget_bytes // (w * itemsize)) // s * s)
        # Shard across TensorCores only when the array is big enough to pay off.
        want_split = num_tc >= 2 and total_bytes > _MEGACORE_SPLIT_MIN_BYTES
        if rows <= budget_rows and not want_split:
            return w, rows, rows                   # grid == 1: single full-array block
        min_steps = 2 * num_tc if want_split else 1  # >= 2 steps/core keeps pipelining
        rows_per_step = -(-rows // min_steps)
        block_rows = min(budget_rows, max(s, (rows_per_step // s) * s))
        if block_rows >= rows:
            block_rows = rows
        return w, rows, block_rows
    return None


# ---------------------------------------------------------------------------
# Pallas kernel: out = x masked to 0 where global flat index in [start, end)
# ---------------------------------------------------------------------------
def _break_kernel(se_ref, x_ref, o_ref):
    start = se_ref[0]                              # int32 scalars from SMEM
    end = se_ref[1]
    br, w = x_ref.shape                            # static block shape
    blk_elems = br * w
    blk_lo = pl.program_id(0) * blk_elems          # first global flat index of block
    blk_hi = blk_lo + blk_elems

    outside = jnp.logical_or(end <= blk_lo, start >= blk_hi)    # break misses block
    covered = jnp.logical_and(start <= blk_lo, end >= blk_hi)   # break covers block

    @pl.when(outside)
    def _():                                       # common case: plain copy, no mask math
        o_ref[...] = x_ref[...]

    @pl.when(covered)
    def _():                                       # block fully inside the break window
        o_ref[...] = jnp.zeros_like(o_ref)

    @pl.when(jnp.logical_and(jnp.logical_not(outside), jnp.logical_not(covered)))
    def _():                                       # 1-2 boundary blocks only
        rows_i = jax.lax.broadcasted_iota(jnp.int32, (br, w), 0)
        cols_i = jax.lax.broadcasted_iota(jnp.int32, (br, w), 1)
        flat = rows_i * w + cols_i                 # block-local flat index
        lo = start - blk_lo                        # scalar bounds shifted into block frame
        hi = end - blk_lo
        keep = jnp.logical_or(flat < lo, flat >= hi)
        # Select (1 VPU op) instead of convert+multiply; identical to x*mask for
        # finite values (non-finite values inside the break window become 0).
        o_ref[...] = jnp.where(keep, x_ref[...], jnp.zeros((), dtype=o_ref.dtype))


@functools.partial(jax.jit, static_argnames=("rows", "w", "block_rows", "vmem_limit"))
def _apply_break_2d(x, se, *, rows, w, block_rows, vmem_limit):
    x2d = jnp.reshape(x, (rows, w))
    grid = pl.cdiv(rows, block_rows)
    y2d = pl.pallas_call(
        _break_kernel,
        out_shape=jax.ShapeDtypeStruct((rows, w), x.dtype),
        grid_spec=pltpu.PrefetchScalarGridSpec(
            num_scalar_prefetch=1,
            grid=(grid,),
            in_specs=[pl.BlockSpec((block_rows, w), lambda i, se_ref: (i, 0))],
            out_specs=pl.BlockSpec((block_rows, w), lambda i, se_ref: (i, 0)),
        ),
        compiler_params=pltpu.CompilerParams(
            dimension_semantics=("parallel",),
            vmem_limit_bytes=vmem_limit,
        ),
    )(se, x2d)
    return jnp.reshape(y2d, x.shape)


def _mask_dim0_jnp(x: jax.Array, break_start: int, break_end: int) -> jax.Array:
    """Fallback (n not a multiple of 128): one fused XLA elementwise pass."""
    shape = (x.shape[0],) + (1,) * (x.ndim - 1)
    idx = jax.lax.broadcasted_iota(jnp.int32, shape, 0)
    keep = jnp.logical_or(idx < break_start, idx >= break_end)
    return x * keep.astype(x.dtype)


# ---------------------------------------------------------------------------
# Module wrapper
# ---------------------------------------------------------------------------
class BreakTransformPallas:
    """JAX/Pallas equivalent of BreakTransform (no learnable parameters)."""

    def __init__(self, sample_rate: int = 24000, break_duration: float = 0.001,
                 break_ceil: int = 50, break_floor: int = 10, p: float = 0.5,
                 seed: int = 0) -> None:
        self.sample_rate = sample_rate
        self.break_segment = sample_rate * break_duration
        self.break_ceil = break_ceil
        self.break_floor = break_floor
        self.p = p
        # Deterministic host-side RNG standing in for python `random`.
        self._rng = random.Random(seed)
        self._block_budget, self._vmem_limit, self._num_tc = _hw_config()

    def _sample_break(self, length: int):
        break_count = (self.break_floor - self.break_ceil) * self._rng.random() + self.break_ceil
        break_duration = break_count * self.break_segment
        break_start = int(length * self._rng.random())
        break_end = int(min(length, break_start + break_duration))
        return break_start, break_end

    def __call__(self, x: jax.Array) -> jax.Array:
        # Host-side Bernoulli(p) decision, as in the PyTorch module (impure: do
        # not wrap __call__ itself in jax.jit).
        if self._rng.random() > self.p:
            return x
        t = int(x.shape[0])
        break_start, break_end = self._sample_break(t)
        if break_end <= break_start:
            return x                                 # mask is all ones

        inner = math.prod(x.shape[1:])               # elements per dim-0 row
        n = t * inner
        if n == 0:
            return x
        start_elem = break_start * inner
        end_elem = break_end * inner
        # TODO(synk): flat indices are int32; inputs with >= 2**31 elements would need int64.

        layout = _pick_layout(n, x.dtype, self._block_budget, self._num_tc)
        if layout is None:
            # n not a multiple of 128: a single fused XLA pass is already at the
            # HBM roofline and avoids any pad / concatenate copies.
            return _mask_dim0_jnp(x, break_start, break_end)

        w, rows, block_rows = layout
        se = jnp.array([start_elem, end_elem], dtype=jnp.int32)
        # TODO(synk): with caller-side donation, input_output_aliases could make
        # this in-place; without donation it would force an extra HBM copy.
        return _apply_break_2d(x, se, rows=rows, w=w, block_rows=block_rows,
                               vmem_limit=self._vmem_limit)


# ---------------------------------------------------------------------------
# Demo / self-test
# ---------------------------------------------------------------------------
if __name__ == "__main__":
    # ~1.024 s of 24 kHz mono audio.
    x = jax.random.normal(jax.random.PRNGKey(0), (24576,), dtype=jnp.float32)

    # Pick a seed whose first random() draw applies the transform so the
    # kernel is actually exercised.
    seed = next(s for s in range(100) if random.Random(s).random() <= 0.5)

    tfm = BreakTransformPallas(seed=seed)
    y = jax.block_until_ready(tfm(x))

    # Pure-JAX reference replaying the same deterministic host-side randoms.
    probe = random.Random(seed)
    assert probe.random() <= tfm.p
    break_count = (tfm.break_floor - tfm.break_ceil) * probe.random() + tfm.break_ceil
    break_dur = break_count * tfm.break_segment
    bs = int(x.shape[0] * probe.random())
    be = int(min(x.shape[0], bs + break_dur))
    idx = jnp.arange(x.shape[0])
    y_ref = x * jnp.logical_or(idx < bs, idx >= be).astype(x.dtype)

    assert y.shape == x.shape and y.dtype == x.dtype
    assert be > bs and bool(jnp.all(y[bs:be] == 0.0)), "break region not zeroed"
    assert jnp.allclose(y, y_ref), "mismatch vs reference (1-D)"

    # Multi-dim input: the break zeroes whole rows along dim 0.
    x2 = jax.random.normal(jax.random.PRNGKey(1), (2048, 16), dtype=jnp.float32)
    tfm2 = BreakTransformPallas(seed=seed)
    y2 = jax.block_until_ready(tfm2(x2))

    probe2 = random.Random(seed)
    assert probe2.random() <= tfm2.p
    bc2 = (tfm2.break_floor - tfm2.break_ceil) * probe2.random() + tfm2.break_ceil
    bd2 = bc2 * tfm2.break_segment
    bs2 = int(x2.shape[0] * probe2.random())
    be2 = int(min(x2.shape[0], bs2 + bd2))
    idx2 = jnp.arange(x2.shape[0])
    mask2 = jnp.logical_or(idx2 < bs2, idx2 >= be2).astype(x2.dtype)[:, None]
    assert jnp.allclose(y2, x2 * mask2), "mismatch vs reference (2-D)"

    print("KERNEL_OK")
</pallas_src>

<mosaic_0001>
module attributes {stable_mosaic.version = 11 : i64} {
  func.func @_break_kernel(%arg0: i32, %arg1: memref<2xi32, #tpu.memory_space<smem>>, %arg2: memref<6x4096xf32, #tpu.memory_space<vmem>>, %arg3: memref<6x4096xf32, #tpu.memory_space<vmem>>) attributes {dimension_semantics = [#tpu.dimension_semantics<parallel>], iteration_bounds = array<i64: 1>, scalar_prefetch = 1 : i64, scratch_operands = 0 : i64, tpu.core_type = #tpu.core_type<tc>, window_params = [{transform_indices = @transform_0, window_bounds = array<i64: 6, 4096>}, {transform_indices = @transform_1, window_bounds = array<i64: 6, 4096>}]} {
    %c0 = arith.constant 0 : index
    %0 = memref.load %arg1[%c0] : memref<2xi32, #tpu.memory_space<smem>>
    %c1 = arith.constant 1 : index
    %1 = memref.load %arg1[%c1] : memref<2xi32, #tpu.memory_space<smem>>
    %c24576_i32 = arith.constant 24576 : i32
    %2 = arith.muli %arg0, %c24576_i32 : i32
    %c24576_i32_0 = arith.constant 24576 : i32
    %3 = arith.addi %2, %c24576_i32_0 : i32
    %4 = arith.cmpi sle, %1, %2 : i32
    %5 = arith.cmpi sge, %0, %3 : i32
    %6 = arith.ori %4, %5 : i1
    %7 = arith.cmpi sle, %0, %2 : i32
    %8 = arith.cmpi sge, %1, %3 : i32
    %9 = arith.andi %7, %8 : i1
    %10 = arith.extui %6 : i1 to i32
    %c0_i32 = arith.constant 0 : i32
    %11 = arith.cmpi ne, %10, %c0_i32 : i32
    scf.if %11 {
      %c0_4 = arith.constant 0 : index
      %c0_5 = arith.constant 0 : index
      %19 = vector.load %arg2[%c0_4, %c0_5] : memref<6x4096xf32, #tpu.memory_space<vmem>>, vector<6x4096xf32>
      %c0_6 = arith.constant 0 : index
      %c0_7 = arith.constant 0 : index
      %20 = vector.load %arg3[%c0_6, %c0_7] : memref<6x4096xf32, #tpu.memory_space<vmem>>, vector<6x4096xf32>
      tpu.vector_store %arg3[%c0_6, %c0_7], %19 {strides = array<i32>} : memref<6x4096xf32, #tpu.memory_space<vmem>>, vector<6x4096xf32>,
    } else {
    }
    %12 = arith.extui %9 : i1 to i32
    %c0_i32_1 = arith.constant 0 : i32
    %13 = arith.cmpi ne, %12, %c0_i32_1 : i32
    scf.if %13 {
      %cst = arith.constant 0.000000e+00 : f32
      %19 = vector.broadcast %cst : f32 to vector<6x4096xf32>
      %c0_4 = arith.constant 0 : index
      %c0_5 = arith.constant 0 : index
      %20 = vector.load %arg3[%c0_4, %c0_5] : memref<6x4096xf32, #tpu.memory_space<vmem>>, vector<6x4096xf32>
      tpu.vector_store %arg3[%c0_4, %c0_5], %19 {strides = array<i32>} : memref<6x4096xf32, #tpu.memory_space<vmem>>, vector<6x4096xf32>,
    } else {
    }
    %true = arith.constant true
    %14 = arith.xori %6, %true : i1
    %true_2 = arith.constant true
    %15 = arith.xori %9, %true_2 : i1
    %16 = arith.andi %14, %15 : i1
    %17 = arith.extui %16 : i1 to i32
    %c0_i32_3 = arith.constant 0 : i32
    %18 = arith.cmpi ne, %17, %c0_i32_3 : i32
    scf.if %18 {
      %19 = tpu.iota {dimensions = array<i32: 0>} : vector<6x4096xi32>
      %20 = tpu.iota {dimensions = array<i32: 1>} : vector<6x4096xi32>
      %c4096_i32 = arith.constant 4096 : i32
      %21 = vector.broadcast %c4096_i32 : i32 to vector<6x4096xi32>
      %22 = arith.muli %19, %21 : vector<6x4096xi32>
      %23 = arith.addi %22, %20 : vector<6x4096xi32>
      %24 = arith.subi %0, %2 : i32
      %25 = arith.subi %1, %2 : i32
      %26 = vector.broadcast %24 : i32 to vector<6x4096xi32>
      %27 = arith.cmpi slt, %23, %26 : vector<6x4096xi32>
      %28 = vector.broadcast %25 : i32 to vector<6x4096xi32>
      %29 = arith.cmpi sge, %23, %28 : vector<6x4096xi32>
      %30 = arith.ori %27, %29 : vector<6x4096xi1>
      %c0_4 = arith.constant 0 : index
      %c0_5 = arith.constant 0 : index
      %31 = vector.load %arg2[%c0_4, %c0_5] : memref<6x4096xf32, #tpu.memory_space<vmem>>, vector<6x4096xf32>
      %cst = arith.constant 0.000000e+00 : f32
      %32 = vector.broadcast %cst : f32 to vector<6x4096xf32>
      %33 = arith.select %30, %31, %32 : vector<6x4096xi1>, vector<6x4096xf32>
      %c0_6 = arith.constant 0 : index
      %c0_7 = arith.constant 0 : index
      %34 = vector.load %arg3[%c0_6, %c0_7] : memref<6x4096xf32, #tpu.memory_space<vmem>>, vector<6x4096xf32>
      tpu.vector_store %arg3[%c0_6, %c0_7], %33 {strides = array<i32>} : memref<6x4096xf32, #tpu.memory_space<vmem>>, vector<6x4096xf32>,
    } else {
    }
    return
  }
  func.func @transform_0(%arg0: i32, %arg1: memref<2xi32, #tpu.memory_space<smem>>) -> (i32, i32) {
    %c0_i32 = arith.constant 0 : i32
    %c0_i32_0 = arith.constant 0 : i32
    return %arg0, %c0_i32 : i32, i32
  }
  func.func @transform_1(%arg0: i32, %arg1: memref<2xi32, #tpu.memory_space<smem>>) -> (i32, i32) {
    %c0_i32 = arith.constant 0 : i32
    %c0_i32_0 = arith.constant 0 : i32
    return %arg0, %c0_i32 : i32, i32
  }
}

</mosaic_0001>

<bundles_post_ra>
// kernel: _apply_break_2d.1
= control target key start
LH: loop header
LB: loop body
LE: loop exit
PB: predicated region body
PF: predicated region fallthrough
CT: control target
= control target key end

     0   :  { %s731_s0 = inlined_call_operand.hbm [shape: s32[2], index: 0, kind: input, shape index: {}]   ;;  %s732_s1 = inlined_call_operand.hbm [shape: f32[6,4096], index: 1, kind: input, shape index: {}]   ;;  %s733_s2 = inlined_call_operand.hbm [shape: f32[6,4096], index: 2, kind: output, shape index: {}]  }
   0x1   :  { %s428_s11 = scalar_lea.hbm %s731_s0, 16 }
   0x2   :  { %p429_p0 = scmp.ne.s32.totalorder %s731_s0, %s428_s11  ;;  %p432_p1 = scmp.lt.u32.totalorder %s428_s11, %s731_s0 }
   0x4   :  { %p434_p2 = pnand %p432_p1, %p429_p0 }
   0x6   :  { %437 = shalt.err (!%p434_p2)  }
   0x7   :  { %s488_s16 = smov [#allocation3]  }
   0x8   :  { %8 = dma.hbm_to_smem %s731_s0, 16, %s488_s16, [#allocation2] }
   0x9   :  { %482 = dma.done.wait [#allocation2], 16 }
   0xa   :  { %483 = vsyncadd [#allocation2], 4294967280 }
   0xb   :  { %10 = sfence }
   0xc   :  { %11 = vsyncpa [#allocation5], 0 }
   0xd   :  { %12 = vsyncpa [#allocation6], 0  ;;  %s489_s19 = smov [#allocation4]   ;;  %s438_s23 = scalar_lea.hbm %s732_s1, 4096 }
   0xe   :  { %s19_s20 = sshll.u32 %s489_s19, 4  ;;  %p439_p3 = scmp.ne.s32.totalorder %s732_s1, %s438_s23  ;;  %s20_s20 = int_to_ptr.vmem [resolvable:$true] %s19_s20 }
   0xf   :  { %p442_p4 = scmp.lt.u32.totalorder %s438_s23, %s732_s1 }
  0x11   :  { %p444_p5 = pnand %p442_p4, %p439_p3 }
  0x13   :  { %447 = shalt.err (!%p444_p5)
}
  0x14   :  { %s448_s0 = scalar_lea.vmem %s20_s20, 4096  ;;  %p453_p7 = scmp.lt.s32.totalorder %s20_s20, %s20_s20 }
  0x15   :  { %p449_p6 = scmp.ne.s32.totalorder %s20_s20, %s448_s0  ;;  %p454_p8 = scmp.lt.s32.totalorder %s448_s0, %s448_s0 }
  0x17   :  { %p455_p9 = por %p454_p8, %p453_p7 }
  0x19   :  { %p456_p10 = pnand %p455_p9, %p449_p6 }
  0x1b   :  { %459 = shalt.err (!%p456_p10)
}
  0x1c   :  { %22 = dma.hbm_to_vmem [thread:$0]  %s732_s1, 4096, %s20_s20, [#allocation5]  }
  0x1d   :  { %484 = dma.done.wait [#allocation5], 4096  }
  0x1e   :  { %485 = vsyncadd [#allocation5], 4294963200  ;;  %s531_s30 = sld [smem:[#allocation3]]  ;;  %s533_s3 = sld [smem:[#allocation3 + $0x1]] }
  0x24   :  { %p30_p11 = scmp.le.s32.totalorder %s533_s3, 0  ;;  %p31_p12 = scmp.ge.s32.totalorder %s531_s30, 24576 }
  0x25   :  { %p33_p13 = scmp.le.s32.totalorder %s531_s30, 0  ;;  %p34_p0 = scmp.ge.s32.totalorder %s533_s3, 24576 }
  0x26   :  { %p539_p1 = por %p31_p12, %p30_p11 }
  0x27   :  { %p543_p2 = pnand %p34_p0, %p33_p13  ;;  %v40_v0 = vld [vmem:[#allocation4] sm:$0x3f] (%p539_p1)  ;;  %v41_v1 = vld [vmem:[#allocation4 + $0x8] sm:$0x3f] (%p539_p1)  ;;  %v42_v2 = vld [vmem:[#allocation4 + $0x10] sm:$0x3f] (%p539_p1) }
  0x28   :  { %39 = sbr.rel (!%p539_p1) target bundleno = 61 (0x3d), region = 13  ;;  %72 = vst [vmem:[#allocation7] sm:$0x3f] (%p539_p1), %v40_v0  ;;  %73 = vst [vmem:[#allocation7 + $0x8] sm:$0x3f] (%p539_p1), %v41_v1 }
  0x29   :  { %74 = vst [vmem:[#allocation7 + $0x10] sm:$0x3f] (%p539_p1), %v42_v2  ;;  %v43_v3 = vld [vmem:[#allocation4 + $0x18] sm:$0x3f] (%p539_p1)  ;;  %v44_v4 = vld [vmem:[#allocation4 + $0x20] sm:$0x3f] (%p539_p1) }
  0x2a   :  { %v45_v5 = vld [vmem:[#allocation4 + $0x28] sm:$0x3f] (%p539_p1)  ;;  %75 = vst [vmem:[#allocation7 + $0x18] sm:$0x3f] (%p539_p1), %v43_v3  ;;  %76 = vst [vmem:[#allocation7 + $0x20] sm:$0x3f] (%p539_p1), %v44_v4 }
  0x2b   :  { %77 = vst [vmem:[#allocation7 + $0x28] sm:$0x3f] (%p539_p1), %v45_v5  ;;  %v46_v6 = vld [vmem:[#allocation4 + $0x30] sm:$0x3f] (%p539_p1)  ;;  %v47_v7 = vld [vmem:[#allocation4 + $0x38] sm:$0x3f] (%p539_p1) }
  0x2c   :  { %v48_v8 = vld [vmem:[#allocation4 + $0x40] sm:$0x3f] (%p539_p1)  ;;  %78 = vst [vmem:[#allocation7 + $0x30] sm:$0x3f] (%p539_p1), %v46_v6  ;;  %79 = vst [vmem:[#allocation7 + $0x38] sm:$0x3f] (%p539_p1), %v47_v7 }
  0x2d   :  { %80 = vst [vmem:[#allocation7 + $0x40] sm:$0x3f] (%p539_p1), %v48_v8  ;;  %v49_v9 = vld [vmem:[#allocation4 + $0x48] sm:$0x3f] (%p539_p1)  ;;  %v50_v10 = vld [vmem:[#allocation4 + $0x50] sm:$0x3f] (%p539_p1) }
  0x2e   :  { %v51_v11 = vld [vmem:[#allocation4 + $0x58] sm:$0x3f] (%p539_p1)  ;;  %81 = vst [vmem:[#allocation7 + $0x48] sm:$0x3f] (%p539_p1), %v49_v9  ;;  %82 = vst [vmem:[#allocation7 + $0x50] sm:$0x3f] (%p539_p1), %v50_v10 }
  0x2f   :  { %83 = vst [vmem:[#allocation7 + $0x58] sm:$0x3f] %v51_v11  ;;  %v52_v12 = vld [vmem:[#allocation4 + $0x60] sm:$0x3f]  ;;  %v53_v13 = vld [vmem:[#allocation4 + $0x68] sm:$0x3f] }
  0x30   :  { %v54_v14 = vld [vmem:[#allocation4 + $0x70] sm:$0x3f]  ;;  %84 = vst [vmem:[#allocation7 + $0x60] sm:$0x3f] %v52_v12  ;;  %85 = vst [vmem:[#allocation7 + $0x68] sm:$0x3f] %v53_v13 }
  0x31   :  { %86 = vst [vmem:[#allocation7 + $0x70] sm:$0x3f] %v54_v14  ;;  %v55_v15 = vld [vmem:[#allocation4 + $0x78] sm:$0x3f]  ;;  %v56_v16 = vld [vmem:[#allocation4 + $0x80] sm:$0x3f] }
  0x32   :  { %v57_v17 = vld [vmem:[#allocation4 + $0x88] sm:$0x3f]  ;;  %87 = vst [vmem:[#allocation7 + $0x78] sm:$0x3f] %v55_v15  ;;  %88 = vst [vmem:[#allocation7 + $0x80] sm:$0x3f] %v56_v16 }
  0x33   :  { %89 = vst [vmem:[#allocation7 + $0x88] sm:$0x3f] %v57_v17  ;;  %v58_v18 = vld [vmem:[#allocation4 + $0x90] sm:$0x3f]  ;;  %v59_v19 = vld [vmem:[#allocation4 + $0x98] sm:$0x3f] }
  0x34   :  { %v60_v20 = vld [vmem:[#allocation4 + $0xa0] sm:$0x3f]  ;;  %90 = vst [vmem:[#allocation7 + $0x90] sm:$0x3f] %v58_v18  ;;  %91 = vst [vmem:[#allocation7 + $0x98] sm:$0x3f] %v59_v19 }
  0x35   :  { %92 = vst [vmem:[#allocation7 + $0xa0] sm:$0x3f] %v60_v20  ;;  %v61_v21 = vld [vmem:[#allocation4 + $0xa8] sm:$0x3f]  ;;  %v62_v22 = vld [vmem:[#allocation4 + $0xb0] sm:$0x3f] }
  0x36   :  { %v63_v23 = vld [vmem:[#allocation4 + $0xb8] sm:$0x3f]  ;;  %93 = vst [vmem:[#allocation7 + $0xa8] sm:$0x3f] %v61_v21  ;;  %94 = vst [vmem:[#allocation7 + $0xb0] sm:$0x3f] %v62_v22 }
  0x37   :  { %95 = vst [vmem:[#allocation7 + $0xb8] sm:$0x3f] %v63_v23  ;;  %v64_v24 = vld [vmem:[#allocation4 + $0xc0] sm:$0x3f]  ;;  %v65_v25 = vld [vmem:[#allocation4 + $0xc8] sm:$0x3f] }
  0x38   :  { %v66_v26 = vld [vmem:[#allocation4 + $0xd0] sm:$0x3f]  ;;  %96 = vst [vmem:[#allocation7 + $0xc0] sm:$0x3f] %v64_v24  ;;  %97 = vst [vmem:[#allocation7 + $0xc8] sm:$0x3f] %v65_v25 }
  0x39   :  { %98 = vst [vmem:[#allocation7 + $0xd0] sm:$0x3f] %v66_v26  ;;  %v67_v27 = vld [vmem:[#allocation4 + $0xd8] sm:$0x3f]  ;;  %v68_v28 = vld [vmem:[#allocation4 + $0xe0] sm:$0x3f] }
  0x3a   :  { %v69_v29 = vld [vmem:[#allocation4 + $0xe8] sm:$0x3f]  ;;  %99 = vst [vmem:[#allocation7 + $0xd8] sm:$0x3f] %v67_v27  ;;  %100 = vst [vmem:[#allocation7 + $0xe0] sm:$0x3f] %v68_v28 }
  0x3b   :  { %101 = vst [vmem:[#allocation7 + $0xe8] sm:$0x3f] %v69_v29  ;;  %v70_v30 = vld [vmem:[#allocation4 + $0xf0] sm:$0x3f]  ;;  %v71_v31 = vld [vmem:[#allocation4 + $0xf8] sm:$0x3f] }
  0x3c   :  { %102 = vst [vmem:[#allocation7 + $0xf0] sm:$0x3f] %v70_v30  ;;  %103 = vst [vmem:[#allocation7 + $0xf8] sm:$0x3f] %v71_v31 }
  0x3d PF:  { %105 = sbr.rel (%p543_p2) target bundleno = 78 (0x4e), region = 17  ;;  %v490_v32 = vmov (!%p543_p2), 0.0  }
  0x3e   :  { %106 = vst [vmem:[#allocation7] sm:$0x3f] (!%p543_p2), %v490_v32  ;;  %107 = vst [vmem:[#allocation7 + $0x8] sm:$0x3f] (!%p543_p2), %v490_v32 }
  0x3f   :  { %108 = vst [vmem:[#allocation7 + $0x10] sm:$0x3f] (!%p543_p2), %v490_v32  ;;  %109 = vst [vmem:[#allocation7 + $0x18] sm:$0x3f] (!%p543_p2), %v490_v32 }
  0x40   :  { %110 = vst [vmem:[#allocation7 + $0x20] sm:$0x3f] (!%p543_p2), %v490_v32  ;;  %111 = vst [vmem:[#allocation7 + $0x28] sm:$0x3f] (!%p543_p2), %v490_v32 }
  0x41   :  { %112 = vst [vmem:[#allocation7 + $0x30] sm:$0x3f] (!%p543_p2), %v490_v32  ;;  %113 = vst [vmem:[#allocation7 + $0x38] sm:$0x3f] (!%p543_p2), %v490_v32 }
  0x42   :  { %114 = vst [vmem:[#allocation7 + $0x40] sm:$0x3f] (!%p543_p2), %v490_v32  ;;  %115 = vst [vmem:[#allocation7 + $0x48] sm:$0x3f] (!%p543_p2), %v490_v32 }
  0x43   :  { %116 = vst [vmem:[#allocation7 + $0x50] sm:$0x3f] (!%p543_p2), %v490_v32  ;;  %117 = vst [vmem:[#allocation7 + $0x58] sm:$0x3f] (!%p543_p2), %v490_v32 }
  0x44   :  { %118 = vst [vmem:[#allocation7 + $0x60] sm:$0x3f] %v490_v32  ;;  %119 = vst [vmem:[#allocation7 + $0x68] sm:$0x3f] %v490_v32 }
  0x45   :  { %120 = vst [vmem:[#allocation7 + $0x70] sm:$0x3f] %v490_v32  ;;  %121 = vst [vmem:[#allocation7 + $0x78] sm:$0x3f] %v490_v32 }
  0x46   :  { %122 = vst [vmem:[#allocation7 + $0x80] sm:$0x3f] %v490_v32  ;;  %123 = vst [vmem:[#allocation7 + $0x88] sm:$0x3f] %v490_v32 }
  0x47   :  { %124 = vst [vmem:[#allocation7 + $0x90] sm:$0x3f] %v490_v32  ;;  %125 = vst [vmem:[#allocation7 + $0x98] sm:$0x3f] %v490_v32 }
  0x48   :  { %126 = vst [vmem:[#allocation7 + $0xa0] sm:$0x3f] %v490_v32  ;;  %127 = vst [vmem:[#allocation7 + $0xa8] sm:$0x3f] %v490_v32 }
  0x49   :  { %128 = vst [vmem:[#allocation7 + $0xb0] sm:$0x3f] %v490_v32  ;;  %129 = vst [vmem:[#allocation7 + $0xb8] sm:$0x3f] %v490_v32 }
  0x4a   :  { %130 = vst [vmem:[#allocation7 + $0xc0] sm:$0x3f] %v490_v32  ;;  %131 = vst [vmem:[#allocation7 + $0xc8] sm:$0x3f] %v490_v32 }
  0x4b   :  { %132 = vst [vmem:[#allocation7 + $0xd0] sm:$0x3f] %v490_v32  ;;  %133 = vst [vmem:[#allocation7 + $0xd8] sm:$0x3f] %v490_v32 }
  0x4c   :  { %134 = vst [vmem:[#allocation7 + $0xe0] sm:$0x3f] %v490_v32  ;;  %135 = vst [vmem:[#allocation7 + $0xe8] sm:$0x3f] %v490_v32 }
  0x4d   :  { %136 = vst [vmem:[#allocation7 + $0xf0] sm:$0x3f] %v490_v32  ;;  %137 = vst [vmem:[#allocation7 + $0xf8] sm:$0x3f] %v490_v32 }
  0x4e PF:  { %p138_p3 = pneg %p539_p1 }
  0x50   :  { %p140_p4 = pnand %p138_p3, %p543_p2 }
  0x51   :  { %v144_v33 = vlaneseq (!%p140_p4)  ;;  %v558_v36 = vstv (!%p140_p4), %s531_s30  ;;  %v561_v37 = vstv (!%p140_p4), %s533_s3  ;;  %v312_v50 = vld [vmem:[#allocation4] sm:$0x3f] (!%p140_p4)  ;;  %v313_v55 = vld [vmem:[#allocation4 + $0x8] sm:$0x3f] (!%p140_p4)  ;;  %v314_v56 = vld [vmem:[#allocation4 + $0x10] sm:$0x3f] (!%p140_p4) }
  0x52   :  { %143 = sbr.rel (%p140_p4) target bundleno = 130 (0x82), region = 21  ;;  %v315_v58 = vld [vmem:[#allocation4 + $0x18] sm:$0x3f] (!%p140_p4)  ;;  %v316_v60 = vld [vmem:[#allocation4 + $0x20] sm:$0x3f] (!%p140_p4) }
  0x53   :  { %v145_v34 = vshrl.u32 (!%p140_p4), %v144_v33, 7  ;;  %v555_v35 = vand.u32 (!%p140_p4), 127, %v144_v33  ;;  %v317_v62 = vld [vmem:[#allocation4 + $0x28] sm:$0x3f] (!%p140_p4)  ;;  %v318_v1 = vld [vmem:[#allocation4 + $0x30] sm:$0x3f] (!%p140_p4) }
  0x54   :  { %v319_v6 = vld [vmem:[#allocation4 + $0x38] sm:$0x3f] (!%p140_p4)  ;;  %v320_v11 = vld [vmem:[#allocation4 + $0x40] sm:$0x3f] (!%p140_p4)  ;;  %v321_v16 = vld [vmem:[#allocation4 + $0x48] sm:$0x3f] (!%p140_p4) }
  0x55   :  { %v563_v38 = vmul.u32 (!%p140_p4), 4096, %v145_v34  ;;  %v148_v39 = vadd.s32 (!%p140_p4), 128, %v555_v35  ;;  %v149_v40 = vadd.s32 (!%p140_p4), 256, %v555_v35  ;;  %v150_v41 = vadd.s32 (!%p140_p4), 384, %v555_v35  ;;  %v322_v19 = vld [vmem:[#allocation4 + $0x50] sm:$0x3f] (!%p140_p4) }
  0x56   :  { %v151_v42 = vadd.s32 (!%p140_p4), 512, %v555_v35  ;;  %v152_v43 = vadd.s32 (!%p140_p4), 640, %v555_v35  ;;  %v153_v44 = vadd.s32 (!%p140_p4), 768, %v555_v35  ;;  %v154_v45 = vadd.s32 (!%p140_p4), 896, %v555_v35  ;;  %v323_v21 = vld [vmem:[#allocation4 + $0x58] sm:$0x3f] (!%p140_p4) }
  0x57   :  { %v180_v46 = vadd.s32 (!%p140_p4), %v563_v38, %v555_v35  ;;  %v181_v47 = vadd.s32 (!%p140_p4), %v563_v38, %v148_v39  ;;  %v182_v48 = vadd.s32 (!%p140_p4), %v563_v38, %v149_v40  ;;  %v183_v49 = vadd.s32 (!%p140_p4), %v563_v38, %v150_v41  ;;  %v324_v23 = vld [vmem:[#allocation4 + $0x60] sm:$0x3f] (!%p140_p4)  ;;  %v325_v26 = vld [vmem:[#allocation4 + $0x68] sm:$0x3f] (!%p140_p4)  ;;  %v326_v41 = vld [vmem:[#allocation4 + $0x70] sm:$0x3f] (!%p140_p4) }
  0x58   :  { %v184_v51 = vadd.s32 (!%p140_p4), %v563_v38, %v151_v42  ;;  %v185_v52 = vadd.s32 (!%p140_p4), %v563_v38, %v152_v43  ;;  %v186_v53 = vadd.s32 (!%p140_p4), %v563_v38, %v153_v44  ;;  %v187_v54 = vadd.s32 (!%p140_p4), %v563_v38, %v154_v45  ;;  %v327_v45 = vld [vmem:[#allocation4 + $0x78] sm:$0x3f] (!%p140_p4) }
  0x59   :  { %vm215_vm0 = vcmp.lt.s32.totalorder %v180_v46, %v558_v36  ;;  %vm248_vm1 = vcmp.ge.s32.totalorder %v180_v46, %v561_v37  ;;  %vm216_vm2 = vcmp.lt.s32.totalorder %v181_v47, %v558_v36  ;;  %vm249_vm3 = vcmp.ge.s32.totalorder %v181_v47, %v561_v37  ;;  %v328_v46 = vld [vmem:[#allocation4 + $0x80] sm:$0x3f] }
  0x5a   :  { %vm280_vm4 = vmor %vm215_vm0, %vm248_vm1  ;;  %vm217_vm5 = vcmp.lt.s32.totalorder %v182_v48, %v558_v36  ;;  %vm250_vm6 = vcmp.ge.s32.totalorder %v182_v48, %v561_v37  ;;  %vm218_vm7 = vcmp.lt.s32.totalorder %v183_v49, %v558_v36  ;;  %vm251_vm8 = vcmp.ge.s32.totalorder %v183_v49, %v561_v37  ;;  %v329_v48 = vld [vmem:[#allocation4 + $0x88] sm:$0x3f] }
  0x5b   :  { %v344_v57 = vsel %vm280_vm4, %v312_v50, 0.0  ;;  %vm281_vm9 = vmor %vm216_vm2, %vm249_vm3  ;;  %vm219_vm10 = vcmp.lt.s32.totalorder %v184_v51, %v558_v36  ;;  %vm252_vm11 = vcmp.ge.s32.totalorder %v184_v51, %v561_v37  ;;  %vm220_vm12 = vcmp.lt.s32.totalorder %v185_v52, %v558_v36 }
  0x5c   :  { %376 = vst [vmem:[#allocation7] sm:$0x3f] %v344_v57  ;;  %v345_v59 = vsel %vm281_vm9, %v313_v55, 0.0  ;;  %vm282_vm13 = vmor %vm217_vm5, %vm250_vm6  ;;  %vm253_vm14 = vcmp.ge.s32.totalorder %v185_v52, %v561_v37  ;;  %vm221_vm15 = vcmp.lt.s32.totalorder %v186_v53, %v558_v36  ;;  %vm254_vm0 = vcmp.ge.s32.totalorder %v186_v53, %v561_v37  ;;  %v330_v53 = vld [vmem:[#allocation4 + $0x90] sm:$0x3f] }
  0x5d   :  { %377 = vst [vmem:[#allocation7 + $0x8] sm:$0x3f] %v345_v59  ;;  %v346_v61 = vsel %vm282_vm13, %v314_v56, 0.0  ;;  %vm283_vm1 = vmor %vm218_vm7, %vm251_vm8  ;;  %vm222_vm2 = vcmp.lt.s32.totalorder %v187_v54, %v558_v36  ;;  %vm255_vm3 = vcmp.ge.s32.totalorder %v187_v54, %v561_v37  ;;  %v155_v63 = vadd.s32 1024, %v555_v35 }
  0x5e   :  { %378 = vst [vmem:[#allocation7 + $0x10] sm:$0x3f] %v346_v61  ;;  %v347_v0 = vsel %vm283_vm1, %v315_v58, 0.0  ;;  %vm284_vm4 = vmor %vm219_vm10, %vm252_vm11  ;;  %v156_v2 = vadd.s32 1152, %v555_v35  ;;  %v157_v3 = vadd.s32 1280, %v555_v35  ;;  %v158_v4 = vadd.s32 1408, %v555_v35 }
  0x5f   :  { %379 = vst [vmem:[#allocation7 + $0x18] sm:$0x3f] %v347_v0  ;;  %v348_v5 = vsel %vm284_vm4, %v316_v60, 0.0  ;;  %vm285_vm5 = vmor %vm220_vm12, %vm253_vm14  ;;  %v188_v7 = vadd.s32 %v563_v38, %v155_v63  ;;  %v159_v8 = vadd.s32 1536, %v555_v35  ;;  %v160_v9 = vadd.s32 1664, %v555_v35 }
  0x60   :  { %380 = vst [vmem:[#allocation7 + $0x20] sm:$0x3f] %v348_v5  ;;  %v349_v10 = vsel %vm285_vm5, %v317_v62, 0.0  ;;  %vm286_vm6 = vmor %vm221_vm15, %vm254_vm0  ;;  %v189_v12 = vadd.s32 %v563_v38, %v156_v2  ;;  %v190_v13 = vadd.s32 %v563_v38, %v157_v3  ;;  %v191_v14 = vadd.s32 %v563_v38, %v158_v4  ;;  %v331_v58 = vld [vmem:[#allocation4 + $0x98] sm:$0x3f] }
  0x61   :  { %381 = vst [vmem:[#allocation7 + $0x28] sm:$0x3f] %v349_v10  ;;  %v350_v15 = vsel %vm286_vm6, %v318_v1, 0.0  ;;  %vm287_vm7 = vmor %vm222_vm2, %vm255_vm3  ;;  %vm223_vm8 = vcmp.lt.s32.totalorder %v188_v7, %v558_v36  ;;  %vm256_vm9 = vcmp.ge.s32.totalorder %v188_v7, %v561_v37  ;;  %v192_v17 = vadd.s32 %v563_v38, %v159_v8  ;;  %v332_v63 = vld [vmem:[#allocation4 + $0xa0] sm:$0x3f] }
  0x62   :  { %382 = vst [vmem:[#allocation7 + $0x30] sm:$0x3f] %v350_v15  ;;  %v351_v18 = vsel %vm287_vm7, %v319_v6, 0.0  ;;  %vm288_vm10 = vmor %vm223_vm8, %vm256_vm9  ;;  %vm224_vm11 = vcmp.lt.s32.totalorder %v189_v12, %v558_v36  ;;  %vm257_vm12 = vcmp.ge.s32.totalorder %v189_v12, %v561_v37  ;;  %vm225_vm13 = vcmp.lt.s32.totalorder %v190_v13, %v558_v36  ;;  %v333_v4 = vld [vmem:[#allocation4 + $0xa8] sm:$0x3f] }
  0x63   :  { %383 = vst [vmem:[#allocation7 + $0x38] sm:$0x3f] %v351_v18  ;;  %v352_v20 = vsel %vm288_vm10, %v320_v11, 0.0  ;;  %vm289_vm14 = vmor %vm224_vm11, %vm257_vm12  ;;  %vm258_vm15 = vcmp.ge.s32.totalorder %v190_v13, %v561_v37  ;;  %vm226_vm0 = vcmp.lt.s32.totalorder %v191_v14, %v558_v36  ;;  %vm259_vm1 = vcmp.ge.s32.totalorder %v191_v14, %v561_v37  ;;  %v334_v5 = vld [vmem:[#allocation4 + $0xb0] sm:$0x3f] }
  0x64   :  { %384 = vst [vmem:[#allocation7 + $0x40] sm:$0x3f] %v352_v20  ;;  %v353_v22 = vsel %vm289_vm14, %v321_v16, 0.0  ;;  %vm290_vm2 = vmor %vm225_vm13, %vm258_vm15  ;;  %vm227_vm3 = vcmp.lt.s32.totalorder %v192_v17, %v558_v36  ;;  %vm260_vm4 = vcmp.ge.s32.totalorder %v192_v17, %v561_v37  ;;  %v193_v24 = vadd.s32 %v563_v38, %v160_v9  ;;  %v335_v7 = vld [vmem:[#allocation4 + $0xb8] sm:$0x3f] }
  0x65   :  { %385 = vst [vmem:[#allocation7 + $0x48] sm:$0x3f] %v353_v22  ;;  %v354_v25 = vsel %vm290_vm2, %v322_v19, 0.0  ;;  %vm291_vm5 = vmor %vm226_vm0, %vm259_vm1  ;;  %v161_v27 = vadd.s32 1792, %v555_v35  ;;  %v162_v28 = vadd.s32 1920, %v555_v35  ;;  %v163_v29 = vadd.s32 2048, %v555_v35 }
  0x66   :  { %386 = vst [vmem:[#allocation7 + $0x50] sm:$0x3f] %v354_v25  ;;  %v355_v30 = vsel %vm291_vm5, %v323_v21, 0.0  ;;  %vm292_vm6 = vmor %vm227_vm3, %vm260_vm4  ;;  %vm228_vm7 = vcmp.lt.s32.totalorder %v193_v24, %v558_v36  ;;  %vm261_vm8 = vcmp.ge.s32.totalorder %v193_v24, %v561_v37  ;;  %v164_v31 = vadd.s32 2176, %v555_v35  ;;  %v336_v11 = vld [vmem:[#allocation4 + $0xc0] sm:$0x3f] }
  0x67   :  { %387 = vst [vmem:[#allocation7 + $0x58] sm:$0x3f] %v355_v30  ;;  %v356_v32 = vsel %vm292_vm6, %v324_v23, 0.0  ;;  %vm293_vm9 = vmor %vm228_vm7, %vm261_vm8  ;;  %v194_v33 = vadd.s32 %v563_v38, %v161_v27  ;;  %v195_v34 = vadd.s32 %v563_v38, %v162_v28  ;;  %v196_v39 = vadd.s32 %v563_v38, %v163_v29  ;;  %v337_v18 = vld [vmem:[#allocation4 + $0xc8] sm:$0x3f] }
  0x68   :  { %388 = vst [vmem:[#allocation7 + $0x60] sm:$0x3f] %v356_v32  ;;  %v357_v40 = vsel %vm293_vm9, %v325_v26, 0.0  ;;  %v197_v42 = vadd.s32 %v563_v38, %v164_v31  ;;  %v165_v43 = vadd.s32 2304, %v555_v35  ;;  %v166_v44 = vadd.s32 2432, %v555_v35 }
  0x69   :  { %389 = vst [vmem:[#allocation7 + $0x68] sm:$0x3f] %v357_v40  ;;  %vm229_vm10 = vcmp.lt.s32.totalorder %v194_v33, %v558_v36  ;;  %vm262_vm11 = vcmp.ge.s32.totalorder %v194_v33, %v561_v37  ;;  %vm230_vm12 = vcmp.lt.s32.totalorder %v195_v34, %v558_v36  ;;  %vm263_vm13 = vcmp.ge.s32.totalorder %v195_v34, %v561_v37  ;;  %v338_v23 = vld [vmem:[#allocation4 + $0xd0] sm:$0x3f]  ;;  %v339_v25 = vld [vmem:[#allocation4 + $0xd8] sm:$0x3f] }
  0x6a   :  { %vm294_vm14 = vmor %vm229_vm10, %vm262_vm11  ;;  %vm231_vm15 = vcmp.lt.s32.totalorder %v196_v39, %v558_v36  ;;  %vm264_vm0 = vcmp.ge.s32.totalorder %v196_v39, %v561_v37  ;;  %vm232_vm1 = vcmp.lt.s32.totalorder %v197_v42, %v558_v36  ;;  %vm265_vm2 = vcmp.ge.s32.totalorder %v197_v42, %v561_v37  ;;  %v340_v27 = vld [vmem:[#allocation4 + $0xe0] sm:$0x3f]  ;;  %v341_v30 = vld [vmem:[#allocation4 + $0xe8] sm:$0x3f] }
  0x6b   :  { %v358_v47 = vsel %vm294_vm14, %v326_v41, 0.0  ;;  %vm295_vm3 = vmor %vm230_vm12, %vm263_vm13  ;;  %v198_v49 = vadd.s32 %v563_v38, %v165_v43  ;;  %v199_v50 = vadd.s32 %v563_v38, %v166_v44  ;;  %v167_v51 = vadd.s32 2560, %v555_v35  ;;  %v342_v42 = vld [vmem:[#allocation4 + $0xf0] sm:$0x3f] }
  0x6c   :  { %390 = vst [vmem:[#allocation7 + $0x70] sm:$0x3f] %v358_v47  ;;  %v359_v52 = vsel %vm295_vm3, %v327_v45, 0.0  ;;  %vm296_vm4 = vmor %vm231_vm15, %vm264_vm0  ;;  %v168_v54 = vadd.s32 2688, %v555_v35  ;;  %v169_v55 = vadd.s32 2816, %v555_v35  ;;  %v170_v56 = vadd.s32 2944, %v555_v35 }
  0x6d   :  { %391 = vst [vmem:[#allocation7 + $0x78] sm:$0x3f] %v359_v52  ;;  %v360_v57 = vsel %vm296_vm4, %v328_v46, 0.0  ;;  %vm297_vm5 = vmor %vm232_vm1, %vm265_vm2  ;;  %vm233_vm6 = vcmp.lt.s32.totalorder %v198_v49, %v558_v36  ;;  %vm266_vm7 = vcmp.ge.s32.totalorder %v198_v49, %v561_v37  ;;  %vm234_vm8 = vcmp.lt.s32.totalorder %v199_v50, %v558_v36 }
  0x6e   :  { %392 = vst [vmem:[#allocation7 + $0x80] sm:$0x3f] %v360_v57  ;;  %v361_v59 = vsel %vm297_vm5, %v329_v48, 0.0  ;;  %vm298_vm9 = vmor %vm233_vm6, %vm266_vm7  ;;  %vm267_vm10 = vcmp.ge.s32.totalorder %v199_v50, %v561_v37  ;;  %v200_v60 = vadd.s32 %v563_v38, %v167_v51  ;;  %v201_v61 = vadd.s32 %v563_v38, %v168_v54 }
  0x6f   :  { %393 = vst [vmem:[#allocation7 + $0x88] sm:$0x3f] %v361_v59  ;;  %v362_v62 = vsel %vm298_vm9, %v330_v53, 0.0  ;;  %vm299_vm11 = vmor %vm234_vm8, %vm267_vm10  ;;  %v202_v0 = vadd.s32 %v563_v38, %v169_v55  ;;  %v203_v1 = vadd.s32 %v563_v38, %v170_v56  ;;  %v171_v2 = vadd.s32 3072, %v555_v35 }
  0x70   :  { %394 = vst [vmem:[#allocation7 + $0x90] sm:$0x3f] %v362_v62  ;;  %v363_v3 = vsel %vm299_vm11, %v331_v58, 0.0  ;;  %vm235_vm12 = vcmp.lt.s32.totalorder %v200_v60, %v558_v36  ;;  %vm268_vm13 = vcmp.ge.s32.totalorder %v200_v60, %v561_v37  ;;  %vm236_vm14 = vcmp.lt.s32.totalorder %v201_v61, %v558_v36 }
  0x71   :  { %395 = vst [vmem:[#allocation7 + $0x98] sm:$0x3f] %v363_v3  ;;  %vm300_vm15 = vmor %vm235_vm12, %vm268_vm13  ;;  %vm269_vm0 = vcmp.ge.s32.totalorder %v201_v61, %v561_v37  ;;  %vm237_vm1 = vcmp.lt.s32.totalorder %v202_v0, %v558_v36  ;;  %vm270_vm2 = vcmp.ge.s32.totalorder %v202_v0, %v561_v37  ;;  %vm238_vm3 = vcmp.lt.s32.totalorder %v203_v1, %v558_v36 }
  0x72   :  { %v364_v6 = vsel %vm300_vm15, %v332_v63, 0.0  ;;  %vm301_vm4 = vmor %vm236_vm14, %vm269_vm0  ;;  %vm271_vm5 = vcmp.ge.s32.totalorder %v203_v1, %v561_v37  ;;  %v204_v8 = vadd.s32 %v563_v38, %v171_v2  ;;  %v172_v9 = vadd.s32 3200, %v555_v35 }
  0x73   :  { %396 = vst [vmem:[#allocation7 + $0xa0] sm:$0x3f] %v364_v6  ;;  %v365_v10 = vsel %vm301_vm4, %v333_v4, 0.0  ;;  %vm302_vm6 = vmor %vm237_vm1, %vm270_vm2  ;;  %v173_v12 = vadd.s32 3328, %v555_v35  ;;  %v174_v13 = vadd.s32 3456, %v555_v35  ;;  %v175_v14 = vadd.s32 3584, %v555_v35 }
  0x74   :  { %397 = vst [vmem:[#allocation7 + $0xa8] sm:$0x3f] %v365_v10  ;;  %v366_v15 = vsel %vm302_vm6, %v334_v5, 0.0  ;;  %vm303_vm7 = vmor %vm238_vm3, %vm271_vm5  ;;  %vm239_vm8 = vcmp.lt.s32.totalorder %v204_v8, %v558_v36  ;;  %vm272_vm9 = vcmp.ge.s32.totalorder %v204_v8, %v561_v37  ;;  %v205_v16 = vadd.s32 %v563_v38, %v172_v9 }
  0x75   :  { %398 = vst [vmem:[#allocation7 + $0xb0] sm:$0x3f] %v366_v15  ;;  %v367_v17 = vsel %vm303_vm7, %v335_v7, 0.0  ;;  %vm304_vm10 = vmor %vm239_vm8, %vm272_vm9  ;;  %v206_v19 = vadd.s32 %v563_v38, %v173_v12  ;;  %v207_v20 = vadd.s32 %v563_v38, %v174_v13  ;;  %v208_v21 = vadd.s32 %v563_v38, %v175_v14 }
  0x76   :  { %399 = vst [vmem:[#allocation7 + $0xb8] sm:$0x3f] %v367_v17  ;;  %v368_v22 = vsel %vm304_vm10, %v336_v11, 0.0  ;;  %vm240_vm11 = vcmp.lt.s32.totalorder %v205_v16, %v558_v36  ;;  %vm273_vm12 = vcmp.ge.s32.totalorder %v205_v16, %v561_v37  ;;  %v176_v24 = vadd.s32 3712, %v555_v35 }
  0x77   :  { %400 = vst [vmem:[#allocation7 + $0xc0] sm:$0x3f] %v368_v22  ;;  %vm305_vm13 = vmor %vm240_vm11, %vm273_vm12  ;;  %vm241_vm14 = vcmp.lt.s32.totalorder %v206_v19, %v558_v36  ;;  %vm274_vm15 = vcmp.ge.s32.totalorder %v206_v19, %v561_v37  ;;  %vm242_vm0 = vcmp.lt.s32.totalorder %v207_v20, %v558_v36  ;;  %vm275_vm1 = vcmp.ge.s32.totalorder %v207_v20, %v561_v37 }
  0x78   :  { %v369_v26 = vsel %vm305_vm13, %v337_v18, 0.0  ;;  %vm306_vm2 = vmor %vm241_vm14, %vm274_vm15  ;;  %vm243_vm3 = vcmp.lt.s32.totalorder %v208_v21, %v558_v36  ;;  %vm276_vm4 = vcmp.ge.s32.totalorder %v208_v21, %v561_v37  ;;  %v209_v28 = vadd.s32 %v563_v38, %v176_v24 }
  0x79   :  { %401 = vst [vmem:[#allocation7 + $0xc8] sm:$0x3f] %v369_v26  ;;  %v370_v29 = vsel %vm306_vm2, %v338_v23, 0.0  ;;  %vm307_vm5 = vmor %vm242_vm0, %vm275_vm1  ;;  %v177_v31 = vadd.s32 3840, %v555_v35  ;;  %v178_v32 = vadd.s32 3968, %v555_v35 }
  0x7a   :  { %402 = vst [vmem:[#allocation7 + $0xd0] sm:$0x3f] %v370_v29  ;;  %v371_v33 = vsel %vm307_vm5, %v339_v25, 0.0  ;;  %vm308_vm6 = vmor %vm243_vm3, %vm276_vm4  ;;  %vm244_vm7 = vcmp.lt.s32.totalorder %v209_v28, %v558_v36  ;;  %vm277_vm8 = vcmp.ge.s32.totalorder %v209_v28, %v561_v37  ;;  %v343_v35 = vld [vmem:[#allocation4 + $0xf8] sm:$0x3f] }
  0x7b   :  { %403 = vst [vmem:[#allocation7 + $0xd8] sm:$0x3f] %v371_v33  ;;  %v372_v34 = vsel %vm308_vm6, %v340_v27, 0.0  ;;  %vm309_vm9 = vmor %vm244_vm7, %vm277_vm8  ;;  %v210_v39 = vadd.s32 %v563_v38, %v177_v31  ;;  %v211_v40 = vadd.s32 %v563_v38, %v178_v32 }
  0x7c   :  { %404 = vst [vmem:[#allocation7 + $0xe0] sm:$0x3f] %v372_v34  ;;  %v373_v41 = vsel %vm309_vm9, %v341_v30, 0.0 }
  0x7d   :  { %405 = vst [vmem:[#allocation7 + $0xe8] sm:$0x3f] %v373_v41  ;;  %vm245_vm10 = vcmp.lt.s32.totalorder %v210_v39, %v558_v36  ;;  %vm278_vm11 = vcmp.ge.s32.totalorder %v210_v39, %v561_v37  ;;  %vm246_vm12 = vcmp.lt.s32.totalorder %v211_v40, %v558_v36  ;;  %vm279_vm13 = vcmp.ge.s32.totalorder %v211_v40, %v561_v37 }
  0x7e   :  { %vm310_vm14 = vmor %vm245_vm10, %vm278_vm11 }
  0x7f   :  { %v374_v43 = vsel %vm310_vm14, %v342_v42, 0.0  ;;  %vm311_vm15 = vmor %vm246_vm12, %vm279_vm13 }
  0x80   :  { %406 = vst [vmem:[#allocation7 + $0xf0] sm:$0x3f] %v374_v43  ;;  %v375_v44 = vsel %vm311_vm15, %v343_v35, 0.0 }
  0x81   :  { %407 = vst [vmem:[#allocation7 + $0xf8] sm:$0x3f] %v375_v44 }
  0x82 PF:  { %s491_s5 = smov [#allocation7]  }
  0x83   :  { %s414_s6 = sshll.u32 %s491_s5, 4  ;;  %s415_s6 = int_to_ptr.vmem [resolvable:$true] %s414_s6 }
  0x84   :  { %s460_s7 = scalar_lea.vmem %s415_s6, 4096  ;;  %p465_p6 = scmp.lt.s32.totalorder %s415_s6, %s415_s6 }
  0x85   :  { %p461_p5 = scmp.ne.s32.totalorder %s415_s6, %s460_s7  ;;  %p466_p7 = scmp.lt.s32.totalorder %s460_s7, %s460_s7 }
  0x87   :  { %p467_p8 = por %p466_p7, %p465_p6 }
  0x89   :  { %p468_p9 = pnand %p467_p8, %p461_p5 }
  0x8b   :  { %471 = shalt.err (!%p468_p9)
}
  0x8c   :  { %s472_s10 = scalar_lea.hbm %s733_s2, 4096 }
  0x8d   :  { %p473_p10 = scmp.ne.s32.totalorder %s733_s2, %s472_s10  ;;  %p476_p11 = scmp.lt.u32.totalorder %s472_s10, %s733_s2 }
  0x8f   :  { %p478_p12 = pnand %p476_p11, %p473_p10 }
  0x91   :  { %481 = shalt.err (!%p478_p12)
}
  0x92   :  { %417 = dma.vmem_to_hbm [thread:$0]  %s415_s6, 4096, %s733_s2, [#allocation6]  }
  0x93   :  { %486 = dma.done.wait [#allocation6], 4096  }
  0x94   :  { %487 = vsyncadd [#allocation6], 4294963200 }
  0x95   :  { %421 = vsyncpa [#allocation5], 1 }
  0x96   :  { %422 = vsyncpa [#allocation6], 1 }

</bundles_post_ra>
